<compile_context>
chip_gen: v7x
topology: tpu7x:2x2x1
jax: 0.10.0
libtpu: 0.0.40
codegen_flags: <defaults>
</compile_context>

<pallas_src>
import jax
import jax.numpy as jnp
from jax.experimental import pallas as pl
from jax.experimental.pallas import tpu as pltpu

_LANE = 128


def _round_up(x, m):
    return ((x + m - 1) // m) * m


# ---------------------------------------------------------------------------
# Hardware queries (defensive: fall back to v7x-safe values).
# ---------------------------------------------------------------------------

def _vmem_capacity_bytes():
    try:
        return int(pltpu.get_tpu_info().vmem_capacity_bytes)
    except Exception:
        return 64 * 1024 * 1024          # v7x has the smallest VMEM


def _num_tensorcores():
    # v4 / v5p (megacore) and v7x expose 2 TensorCores per device; v5e / v6e
    # have one TC, so their grid is a serial loop and one big step is fine.
    try:
        kind = jax.devices()[0].device_kind.lower()
    except Exception:
        return 2
    return 2 if any(t in kind for t in ("v7", "v4", "v5p")) else 1


def _vmem_budget_and_limit():
    cap = _vmem_capacity_bytes()
    # v5e/v6e (128 MiB physical): raise the scoped limit to 64 MiB.
    # v7x (64 MiB physical): cap at 48 MiB.
    limit = min(64 * 1024 * 1024, (cap * 3) // 4)
    budget = (limit * 3) // 4            # headroom for Mosaic internals
    return budget, limit


def _choose_group_tile(n_groups, per_group_bytes, budget_bytes, num_tc):
    """Mode-groups per grid step, counting all double-buffered operands."""
    max_tm = max(1, budget_bytes // max(per_group_bytes, 1))
    if num_tc > 1 and n_groups >= 2:
        # Keep >=4 grid steps (>=2 if fewer groups) so both TensorCores get
        # work and each still has a next block to pipeline weight DMA behind.
        target_steps = 4 if n_groups >= 4 else 2
        max_tm = min(max_tm, -(-n_groups // target_steps))
    tm = max(1, min(max_tm, n_groups))
    n_steps = -(-n_groups // tm)
    tm = -(-n_groups // n_steps)         # re-balance: group padding < n_steps
    return tm, n_steps


# ---------------------------------------------------------------------------
# Kernels
# ---------------------------------------------------------------------------

def _spectral_kernel_blockdiag(x_ref, w_ref, o_ref):
    """Small-channel path: one fused real block-matmul per group of modes.

    x_ref: (tm, B, Kp)   per group: [mode j: xr(I) | xi(I)] ... + 0-pad
    w_ref: (tm, Kp, Np)  block-diagonal complex blocks [[wr, wi], [-wi, wr]]
    o_ref: (tm, B, Np)   per group: [mode j: out_r(O) | out_i(O)] ... + 0-pad
    """
    o_ref[...] = jnp.einsum(
        "gbk,gkn->gbn", x_ref[...], w_ref[...],
        preferred_element_type=jnp.float32,
    ).astype(o_ref.dtype)


def _spectral_kernel_dedup(xr_ref, xi_ref, w_ref, o_ref):
    """Large-channel path: de-duplicated [wr | wi] weights, two MXU matmuls,
    lane-aligned (128-multiple) VPU combine.

    xr_ref/xi_ref: (tm, B, Kp)     real / imag of x_ft, Kp = round_up(I, 128)
    w_ref:         (tm, Kp, 2*Hp)  cols [0:Hp)=wr, [Hp:2Hp)=wi, Hp = round_up(O, 128)
    o_ref:         (tm, B, 2*Hp)   cols [0:Hp)=out_r, [Hp:2Hp)=out_i
    """
    w = w_ref[...]
    a = jnp.einsum("gbk,gkn->gbn", xr_ref[...], w,
                   preferred_element_type=jnp.float32)
    b = jnp.einsum("gbk,gkn->gbn", xi_ref[...], w,
                   preferred_element_type=jnp.float32)
    h = a.shape[-1] // 2
    out_r = a[..., :h] - b[..., h:]      # xr@wr - xi@wi
    out_i = a[..., h:] + b[..., :h]      # xr@wi + xi@wr
    o_ref[...] = jnp.concatenate([out_r, out_i], axis=-1).astype(o_ref.dtype)


def _run_grouped_matmul(kernel, inputs, *, tm, out_cols, out_dtype,
                        vmem_limit_bytes, n_matmuls):
    """pallas_call wrapper: grid over groups of modes, tm groups per step."""
    ngp, b = int(inputs[0].shape[0]), int(inputs[0].shape[1])
    kp = int(inputs[0].shape[2])
    n_steps = ngp // tm
    assert n_steps * tm == ngp

    in_specs = [
        pl.BlockSpec((tm,) + tuple(a.shape[1:]), lambda g: (g, 0, 0))
        for a in inputs
    ]
    out_specs = pl.BlockSpec((tm, b, out_cols), lambda g: (g, 0, 0))

    out_isz = jnp.dtype(out_dtype).itemsize
    flops = 2 * n_matmuls * ngp * b * kp * out_cols
    bytes_accessed = (ngp * b * out_cols * out_isz
                      + sum(int(a.size) * a.dtype.itemsize for a in inputs))

    return pl.pallas_call(
        kernel,
        out_shape=jax.ShapeDtypeStruct((ngp, b, out_cols), out_dtype),
        grid=(n_steps,),
        in_specs=in_specs,
        out_specs=out_specs,
        compiler_params=pltpu.CompilerParams(
            dimension_semantics=("parallel",),
            vmem_limit_bytes=int(vmem_limit_bytes),
        ),
        cost_estimate=pl.CostEstimate(
            flops=int(flops), transcendentals=0,
            bytes_accessed=int(bytes_accessed)),
    )(*inputs)


# ---------------------------------------------------------------------------
# Module
# ---------------------------------------------------------------------------

class SpectralConv1d:
    """JAX/Pallas port of the PyTorch SpectralConv1d: x (B, C_in, N) -> (B, C_out, N)."""

    def __init__(self, in_channels, out_channels, modes1, key,
                 compute_dtype=jnp.bfloat16):
        self.in_channels = int(in_channels)
        self.out_channels = int(out_channels)
        self.modes1 = int(modes1)
        self.scale = 1.0 / (in_channels * out_channels)
        # NOTE(perf review): bf16 halves HBM/VMEM traffic, but FFT spectra can
        # have large dynamic range; pass compute_dtype=jnp.float32 if accuracy
        # regressions appear on realistic inputs.
        self.compute_dtype = compute_dtype

        kr, ki = jax.random.split(key)
        shape = (in_channels, out_channels, modes1)
        # torch.rand(..., dtype=cfloat): real and imag parts ~ U[0, 1)
        self.w_real = self.scale * jax.random.uniform(kr, shape, jnp.float32)
        self.w_imag = self.scale * jax.random.uniform(ki, shape, jnp.float32)

        I, O, M = self.in_channels, self.out_channels, self.modes1

        # ---- choose packing layout by per-mode weight-tile bytes -----------
        if 2 * max(I, O) <= _LANE:
            g = max(1, min(_LANE // (2 * I), _LANE // (2 * O), M))
        else:
            g = 1
        kp_a = _round_up(g * 2 * I, _LANE)
        np_a = _round_up(g * 2 * O, _LANE)
        bytes_a = (kp_a * np_a) / g                 # block-diag, dup'd complex block
        kp_b = _round_up(I, _LANE)
        hp_b = _round_up(O, _LANE)
        bytes_b = kp_b * 2 * hp_b                   # de-dup'd [wr | wi]
        self._use_dedup = bytes_b < bytes_a

        # ---- hoisted weight packing (done once, not per forward) -----------
        wr = jnp.transpose(self.w_real, (2, 0, 1))  # (M, I, O)
        wi = jnp.transpose(self.w_imag, (2, 0, 1))

        if self._use_dedup:
            self._G = 1
            self._Kp, self._Hp = kp_b, hp_b
            self._Np = 2 * hp_b
            self._n_groups = M
            w = jnp.zeros((M, self._Kp, self._Np), jnp.float32)
            w = w.at[:, :I, :O].set(wr)
            w = w.at[:, :I, self._Hp:self._Hp + O].set(wi)
        else:
            self._G = g
            self._Kp, self._Np = kp_a, np_a
            self._Hp = None
            self._n_groups = -(-M // g)
            m_pad = self._n_groups * g
            top = jnp.concatenate([wr, wi], axis=-1)       # (M, I, 2O)
            bot = jnp.concatenate([-wi, wr], axis=-1)      # (M, I, 2O)
            blk = jnp.concatenate([top, bot], axis=1)      # (M, 2I, 2O)
            blk = jnp.pad(blk, ((0, m_pad - M), (0, 0), (0, 0)))
            blk = blk.reshape(self._n_groups, g, 2 * I, 2 * O)
            eye = jnp.eye(g, dtype=blk.dtype)
            w = jnp.einsum("gjab,jk->gjakb", blk, eye)     # block-diagonal
            w = w.reshape(self._n_groups, g * 2 * I, g * 2 * O)
            w = jnp.pad(w, ((0, 0), (0, self._Kp - g * 2 * I),
                            (0, self._Np - g * 2 * O)))
        self.w_packed = w.astype(compute_dtype)            # (n_groups, Kp, Np)
        self._w_cache = {}

    def _padded_weights(self, ngp):
        w = self._w_cache.get(ngp)
        if w is None:
            pad = ngp - self.w_packed.shape[0]
            w = self.w_packed if pad == 0 else jnp.pad(
                self.w_packed, ((0, pad), (0, 0), (0, 0)))
            self._w_cache[ngp] = w
        return w

    def __call__(self, x):
        B, Cin, N = x.shape
        if Cin != self.in_channels:
            raise ValueError(f"expected {self.in_channels} channels, got {Cin}")
        n_freq = N // 2 + 1
        M = self.modes1
        if M > n_freq:
            raise ValueError(
                f"modes1={M} exceeds the {n_freq} rfft modes of a length-{N} input")
        I, O, G = self.in_channels, self.out_channels, self._G
        Kp, Np = self._Kp, self._Np
        cdt = self.compute_dtype
        isz = jnp.dtype(cdt).itemsize

        # ---- tile choice: needs B, so it happens here (not in __init__) ----
        n_x_streams = 2 if self._use_dedup else 1
        per_group = 2 * isz * (Kp * Np + n_x_streams * B * Kp + B * Np)
        budget, base_limit = _vmem_budget_and_limit()
        tm, n_steps = _choose_group_tile(self._n_groups, per_group, budget,
                                         _num_tensorcores())
        ngp = tm * n_steps
        vmem_limit = max(base_limit, tm * per_group + (8 << 20))

        # ---- FFT (glue) -----------------------------------------------------
        # TODO(synk): rfft/irfft have no Pallas equivalent; they stay in XLA.
        x_ft = jnp.fft.rfft(x, axis=-1)                    # (B, I, n_freq) c64
        x_m = x_ft[:, :, :M]

        w = self._padded_weights(ngp)

        if self._use_dedup:
            xr = jnp.transpose(x_m.real, (2, 0, 1))        # (M, B, I)
            xi = jnp.transpose(x_m.imag, (2, 0, 1))
            pad = ((0, ngp - M), (0, 0), (0, Kp - I))
            xr = jnp.pad(xr, pad).astype(cdt)
            xi = jnp.pad(xi, pad).astype(cdt)
            out = _run_grouped_matmul(
                _spectral_kernel_dedup, [xr, xi, w], tm=tm, out_cols=Np,
                out_dtype=cdt, vmem_limit_bytes=vmem_limit, n_matmuls=2)
            out = out[:M].astype(jnp.float32)              # (M, B, Np)
            out_c = jax.lax.complex(out[:, :, :O],
                                    out[:, :, self._Hp:self._Hp + O])
            out_ft_m = jnp.transpose(out_c, (1, 2, 0))     # (B, O, M)
        else:
            ngroups = self._n_groups
            m_pad = ngroups * G
            xri = jnp.concatenate([x_m.real, x_m.imag], axis=1)   # (B, 2I, M)
            xri = jnp.pad(xri, ((0, 0), (0, 0), (0, m_pad - M)))
            xg = xri.reshape(B, 2 * I, ngroups, G)
            xg = jnp.transpose(xg, (2, 0, 3, 1)).reshape(ngroups, B, G * 2 * I)
            xg = jnp.pad(xg, ((0, ngp - ngroups), (0, 0),
                              (0, Kp - G * 2 * I))).astype(cdt)
            out = _run_grouped_matmul(
                _spectral_kernel_blockdiag, [xg, w], tm=tm, out_cols=Np,
                out_dtype=cdt, vmem_limit_bytes=vmem_limit, n_matmuls=1)
            out = out[:ngroups, :, :G * 2 * O].astype(jnp.float32)
            out = out.reshape(ngroups, B, G, 2, O)
            out = jnp.transpose(out, (1, 4, 0, 2, 3))      # (B, O, ngroups, G, 2)
            out = out.reshape(B, O, m_pad, 2)[:, :, :M]
            out_ft_m = jax.lax.complex(out[..., 0], out[..., 1])  # (B, O, M)

        out_ft = jnp.pad(out_ft_m, ((0, 0), (0, 0), (0, n_freq - M)))
        return jnp.fft.irfft(out_ft, n=N, axis=-1)         # (B, C_out, N) f32


# ---------------------------------------------------------------------------
# References for validation
# ---------------------------------------------------------------------------

def _reference_forward(module, x):
    """Full-precision float32 reference matching the PyTorch forward."""
    N = x.shape[-1]
    M = module.modes1
    x_ft = jnp.fft.rfft(x, axis=-1)
    w = (module.w_real + 1j * module.w_imag).astype(jnp.complex64)
    out_m = jnp.einsum("bix,iox->box", x_ft[:, :, :M], w)
    out_ft = jnp.zeros((x.shape[0], module.out_channels, N // 2 + 1),
                       dtype=jnp.complex64)
    out_ft = out_ft.at[:, :, :M].set(out_m)
    return jnp.fft.irfft(out_ft, n=N, axis=-1)


def _reference_forward_emulated(module, x):
    """Matmul-free reference emulating the kernel numerics: compute-dtype
    inputs, f32 products/accumulation, compute-dtype writeback."""
    N = x.shape[-1]
    M = module.modes1
    cdt = module.compute_dtype
    x_m = jnp.fft.rfft(x, axis=-1)[:, :, :M]
    xr = x_m.real.astype(cdt).astype(jnp.float32)
    xi = x_m.imag.astype(cdt).astype(jnp.float32)
    wr = module.w_real.astype(cdt).astype(jnp.float32)
    wi = module.w_imag.astype(cdt).astype(jnp.float32)
    pr = jnp.einsum("bim,iom->bom", xr, wr) - jnp.einsum("bim,iom->bom", xi, wi)
    pi = jnp.einsum("bim,iom->bom", xr, wi) + jnp.einsum("bim,iom->bom", xi, wr)
    pr = pr.astype(cdt).astype(jnp.float32)
    pi = pi.astype(cdt).astype(jnp.float32)
    out_ft = jnp.pad(pr + 1j * pi, ((0, 0), (0, 0), (0, N // 2 + 1 - M)))
    return jnp.fft.irfft(out_ft, n=N, axis=-1)


if __name__ == "__main__":
    key = jax.random.PRNGKey(0)
    k_x, k_w, k_x2, k_w2 = jax.random.split(key, 4)

    # --- small-channel config -> block-diagonal mode-packing path -----------
    B, Cin, Cout, N, modes1 = 2, 4, 4, 16, 5
    x = jax.random.normal(k_x, (B, Cin, N), dtype=jnp.float32)
    module = SpectralConv1d(Cin, Cout, modes1, key=k_w)
    out = jax.block_until_ready(module(x))
    assert out.shape == (B, Cout, N)
    ref_emu = jax.block_until_ready(_reference_forward_emulated(module, x))
    assert jnp.allclose(out, ref_emu, atol=2e-3, rtol=2e-3), \
        "block-diag path: mismatch vs kernel-numerics reference"
    ref_f32 = jax.block_until_ready(_reference_forward(module, x))
    assert jnp.allclose(out, ref_f32, atol=2e-2, rtol=2e-2), \
        "block-diag path: mismatch vs float32 reference"

    # --- large-channel config -> de-duplicated [wr|wi] two-matmul path ------
    B2, C2, N2, modes2 = 2, 128, 32, 8
    x2 = jax.random.normal(k_x2, (B2, C2, N2), dtype=jnp.float32)
    module2 = SpectralConv1d(C2, C2, modes2, key=k_w2)
    assert module2._use_dedup
    out2 = jax.block_until_ready(module2(x2))
    assert out2.shape == (B2, C2, N2)
    ref2_emu = jax.block_until_ready(_reference_forward_emulated(module2, x2))
    assert jnp.allclose(out2, ref2_emu, atol=2e-3, rtol=2e-3), \
        "dedup path: mismatch vs kernel-numerics reference"
    ref2_f32 = jax.block_until_ready(_reference_forward(module2, x2))
    assert jnp.allclose(out2, ref2_f32, atol=2e-2, rtol=2e-2), \
        "dedup path: mismatch vs float32 reference"

    print("KERNEL_OK")
</pallas_src>

<mosaic_0001>
module attributes {stable_mosaic.version = 11 : i64} {
  func.func @_spectral_kernel_blockdiag(%arg0: i32, %arg1: memref<1x2x128xbf16, #tpu.memory_space<vmem>>, %arg2: memref<1x128x128xbf16, #tpu.memory_space<vmem>>, %arg3: memref<1x2x128xbf16, #tpu.memory_space<vmem>>) attributes {dimension_semantics = [#tpu.dimension_semantics<parallel>], iteration_bounds = array<i64: 1>, scalar_prefetch = 0 : i64, scratch_operands = 0 : i64, tpu.core_type = #tpu.core_type<tc>, window_params = [{transform_indices = @transform_0, window_bounds = array<i64: 1, 2, 128>}, {transform_indices = @transform_1, window_bounds = array<i64: 1, 128, 128>}, {transform_indices = @transform_2, window_bounds = array<i64: 1, 2, 128>}]} {
    %c0 = arith.constant 0 : index
    %c0_0 = arith.constant 0 : index
    %c0_1 = arith.constant 0 : index
    %0 = vector.load %arg1[%c0, %c0_0, %c0_1] : memref<1x2x128xbf16, #tpu.memory_space<vmem>>, vector<1x2x128xbf16>
    %c0_2 = arith.constant 0 : index
    %c0_3 = arith.constant 0 : index
    %c0_4 = arith.constant 0 : index
    %1 = vector.load %arg2[%c0_2, %c0_3, %c0_4] : memref<1x128x128xbf16, #tpu.memory_space<vmem>>, vector<1x128x128xbf16>
    "tpu.trace_start"() <{level = 10 : i32, message = "gbk,gkn->gbn"}> : () -> ()
    %cst = arith.constant dense<0.000000e+00> : vector<1x2x128xf32>
    %2 = tpu.matmul %0, %1, %cst {dimension_numbers = #tpu.dot_dimension_numbers<[2], [1], [1], [2], [0, 0, 0, 1, 1, 2], [0], [0]>} : vector<1x2x128xbf16>, vector<1x128x128xbf16>, vector<1x2x128xf32> -> vector<1x2x128xf32>
    "tpu.trace_stop"() : () -> ()
    %3 = arith.truncf %2 : vector<1x2x128xf32> to vector<1x2x128xbf16>
    %c0_5 = arith.constant 0 : index
    %c0_6 = arith.constant 0 : index
    %c0_7 = arith.constant 0 : index
    %4 = vector.load %arg3[%c0_5, %c0_6, %c0_7] : memref<1x2x128xbf16, #tpu.memory_space<vmem>>, vector<1x2x128xbf16>
    tpu.vector_store %arg3[%c0_5, %c0_6, %c0_7], %3 {strides = array<i32>} : memref<1x2x128xbf16, #tpu.memory_space<vmem>>, vector<1x2x128xbf16>,
    return
  }
  func.func @transform_0(%arg0: i32) -> (i32, i32, i32) {
    %c0_i32 = arith.constant 0 : i32
    %c0_i32_0 = arith.constant 0 : i32
    %c0_i32_1 = arith.constant 0 : i32
    return %arg0, %c0_i32, %c0_i32_0 : i32, i32, i32
  }
  func.func @transform_1(%arg0: i32) -> (i32, i32, i32) {
    %c0_i32 = arith.constant 0 : i32
    %c0_i32_0 = arith.constant 0 : i32
    %c0_i32_1 = arith.constant 0 : i32
    return %arg0, %c0_i32, %c0_i32_0 : i32, i32, i32
  }
  func.func @transform_2(%arg0: i32) -> (i32, i32, i32) {
    %c0_i32 = arith.constant 0 : i32
    %c0_i32_0 = arith.constant 0 : i32
    %c0_i32_1 = arith.constant 0 : i32
    return %arg0, %c0_i32, %c0_i32_0 : i32, i32, i32
  }
}

</mosaic_0001>

<bundles_post_ra>
// kernel: tpu_custom_call.1
= control target key start
LH: loop header
LB: loop body
LE: loop exit
PB: predicated region body
PF: predicated region fallthrough
CT: control target
= control target key end

     0   :  { %7 = vsyncpa [#allocation3], 0  ;;  %s351_s0 = inlined_call_operand.hbm [shape: bf16[1,2,128], index: 0, kind: input, shape index: {}]   ;;  %s352_s1 = inlined_call_operand.hbm [shape: bf16[1,128,128], index: 1, kind: input, shape index: {}]   ;;  %s353_s2 = inlined_call_operand.hbm [shape: bf16[1,2,128], index: 2, kind: output, shape index: {}]  }
   0x1   :  { %8 = vsyncpa [#allocation6], 0 }
   0x2   :  { %9 = vsyncpa [#allocation4], 0  ;;  %s286_s9 = smov [#allocation2]   ;;  %s287_s11 = smov [#allocation5]  }
   0x3   :  { %s16_s10 = sshll.u32 %s286_s9, 4  ;;  %s25_s12 = sshll.u32 %s287_s11, 4  ;;  %s17_s10 = int_to_ptr.vmem [resolvable:$true] %s16_s10  ;;  %s308_s12 = int_to_ptr.vmem [resolvable:$true] %s25_s12 }
   0x4   :  { %s214_s15 = scalar_lea.hbm %s351_s0, 16 }
   0x5   :  { %p215_p0 = scmp.ne.s32.totalorder %s351_s0, %s214_s15  ;;  %p218_p1 = scmp.lt.u32.totalorder %s214_s15, %s351_s0 }
   0x7   :  { %p220_p2 = pnand %p218_p1, %p215_p0 }
   0x9   :  { %223 = shalt.err (!%p220_p2)
}
   0xa   :  { %s224_s20 = scalar_lea.vmem %s17_s10, 16  ;;  %s228_s21 = scalar_lea.vmem %s17_s10, 32 }
   0xb   :  { %p225_p3 = scmp.ne.s32.totalorder %s17_s10, %s224_s20  ;;  %p229_p4 = scmp.lt.s32.totalorder %s17_s10, %s17_s10 }
   0xc   :  { %p230_p5 = scmp.lt.s32.totalorder %s228_s21, %s224_s20 }
   0xe   :  { %p231_p6 = por %p230_p5, %p229_p4 }
  0x10   :  { %p232_p7 = pnand %p231_p6, %p225_p3 }
  0x12   :  { %235 = shalt.err (!%p232_p7)
}
  0x13   :  { %19 = dma.hbm_to_vmem [thread:$0]  %s351_s0, 16, %s17_s10, [#allocation3]  }
  0x14   :  { %s236_s26 = scalar_lea.hbm %s352_s1, 1024 }
  0x15   :  { %p237_p8 = scmp.ne.s32.totalorder %s352_s1, %s236_s26  ;;  %p240_p9 = scmp.lt.u32.totalorder %s236_s26, %s352_s1 }
  0x17   :  { %p242_p10 = pnand %p240_p9, %p237_p8 }
  0x19   :  { %245 = shalt.err (!%p242_p10)
}
  0x1a   :  { %s246_s3 = scalar_lea.vmem %s308_s12, 1024  ;;  %p251_p12 = scmp.lt.s32.totalorder %s308_s12, %s308_s12 }
  0x1b   :  { %p247_p11 = scmp.ne.s32.totalorder %s308_s12, %s246_s3  ;;  %p252_p13 = scmp.lt.s32.totalorder %s246_s3, %s246_s3 }
  0x1d   :  { %p253_p0 = por %p252_p13, %p251_p12 }
  0x1f   :  { %p254_p1 = pnand %p253_p0, %p247_p11 }
  0x21   :  { %257 = shalt.err (!%p254_p1)
}
  0x22   :  { %s288_s0 = smov 64   ;;  %s289_s4 = smov 4  }
  0x23   :  { %31 = dma.hbm_to_vmem [thread:$0]  %s352_s1, 1024, %s308_s12, [#allocation6], %s288_s0, %s288_s0, %s289_s4  }
  0x24   :  { %280 = dma.done.wait [#allocation3], 16  }
  0x25   :  { %281 = vsyncadd [#allocation3], 4294967280 }
  0x26   :  { %282 = dma.done.wait [#allocation6], 1024  }
  0x27   :  { %283 = vsyncadd [#allocation6], 4294966272  ;;  %v290_v0 = vmov 0.0   ;;  %vm291_vm0 = vmmov 0   ;;  %v206_v1 = vld [vmem:[#allocation5] sm:$0xff]   ;;  %v207_v2 = vld [vmem:[#allocation5 + $0x8] sm:$0xff]  }
  0x28   :  { %179 = vmatprep.subr.bf16.mxu0 %v290_v0  ;;  %195 = vmatprep.mubr.msk.bf16.mxu0 %vm291_vm0, %v290_v0  ;;  %v208_v3 = vld [vmem:[#allocation5 + $0x10] sm:$0xff]   ;;  %v209_v4 = vld [vmem:[#allocation5 + $0x18] sm:$0xff]   ;;  %v210_v5 = vld [vmem:[#allocation5 + $0x20] sm:$0xff]   ;;  %s292_s1 = smov [#allocation7]  }
  0x29   :  { %180 = vmatpush3.bf16.msra.mxu0 %v206_v1  ;;  %v211_v6 = vld [vmem:[#allocation5 + $0x28] sm:$0xff]   ;;  %v212_v7 = vld [vmem:[#allocation5 + $0x30] sm:$0xff]   ;;  %v213_v8 = vld [vmem:[#allocation5 + $0x38] sm:$0xff]   ;;  %s152_s7 = sshll.u32 %s292_s1, 4  ;;  %s153_s7 = int_to_ptr.vmem [resolvable:$true] %s152_s7 }
  0x2a   :  { %181 = vmatprep.subr.bf16.mxu0 %v290_v0  ;;  %v39_v9 = vld [vmem:[#allocation2] sm:$0x1]  ;;  %s258_s8 = scalar_lea.vmem %s153_s7, 16  ;;  %s262_s9 = scalar_lea.vmem %s153_s7, 32 }
  0x2b   :  { %p259_p2 = scmp.ne.s32.totalorder %s153_s7, %s258_s8  ;;  %p263_p3 = scmp.lt.s32.totalorder %s153_s7, %s153_s7 }
  0x2c   :  { %p264_p4 = scmp.lt.s32.totalorder %s262_s9, %s258_s8 }
  0x2d   :  { %182 = vmatpush3.bf16.msra.mxu0 %v207_v2 }
  0x2e   :  { %183 = vmatprep.subr.bf16.mxu0 %v290_v0  ;;  %p265_p5 = por %p264_p4, %p263_p3 }
  0x30   :  { %p266_p6 = pnand %p265_p5, %p259_p2 }
  0x31   :  { %184 = vmatpush3.bf16.msra.mxu0 %v208_v3 }
  0x32   :  { %185 = vmatprep.subr.bf16.mxu0 %v290_v0 }
  0x35   :  { %186 = vmatpush3.bf16.msra.mxu0 %v209_v4 }
  0x36   :  { %187 = vmatprep.subr.bf16.mxu0 %v290_v0 }
  0x39   :  { %188 = vmatpush3.bf16.msra.mxu0 %v210_v5 }
  0x3a   :  { %189 = vmatprep.subr.bf16.mxu0 %v290_v0 }
  0x3d   :  { %190 = vmatpush3.bf16.msra.mxu0 %v211_v6 }
  0x3e   :  { %191 = vmatprep.subr.bf16.mxu0 %v290_v0 }
  0x41   :  { %192 = vmatpush3.bf16.msra.mxu0 %v212_v7 }
  0x42   :  { %193 = vmatprep.subr.bf16.mxu0 %v290_v0 }
  0x45   :  { %194 = vmatpush3.bf16.msra.mxu0 %v213_v8 }
  0x48   :  { %196 = vmatmul.mubr.bf16.vlgmr.msra.gmra.mrb[0].mxu0 %v39_v9 }
 0x11b   :  { %v138_v10 = vpop.f32.mrb[0].mxu0 }
 0x11c   :  { %v144_v11 = vpack.c.bf16 %v138_v10, %v138_v10  ;;  %v197_v12 = vpop.f32.mrb[1].mxu0 }
 0x11d   :  { %v141_v13 = vpop.f32.mrb[2].mxu0 }
 0x11e   :  { %145 = vst [vmem:[#allocation7] sm:$0x1] %v144_v11  ;;  %v198_v14 = vpop.f32.mrb[3].mxu0 }
 0x11f   :  { %269 = shalt.err (!%p266_p6)
}
 0x120   :  { %s270_s12 = scalar_lea.hbm %s353_s2, 16 }
 0x121   :  { %p271_p7 = scmp.ne.s32.totalorder %s353_s2, %s270_s12  ;;  %p274_p8 = scmp.lt.u32.totalorder %s270_s12, %s353_s2 }
 0x123   :  { %p276_p9 = pnand %p274_p8, %p271_p7 }
 0x125   :  { %279 = shalt.err (!%p276_p9)
}
 0x126   :  { %155 = dma.vmem_to_hbm [thread:$0]  %s153_s7, 16, %s353_s2, [#allocation4]  }
 0x127   :  { %284 = dma.done.wait [#allocation4], 16  }
 0x128   :  { %285 = vsyncadd [#allocation4], 4294967280 }
 0x129   :  { %159 = vsyncpa [#allocation3], 1 }
 0x12a   :  { %160 = vsyncpa [#allocation6], 1 }
 0x12b   :  { %161 = vsyncpa [#allocation4], 1 }

</bundles_post_ra>
